<compile_context>
chip_gen: v7x
topology: tpu7x:2x2x1
jax: 0.10.0
libtpu: 0.0.40
codegen_flags: <defaults>
</compile_context>

<pallas_src>
import jax
import jax.numpy as jnp
from jax.experimental import pallas as pl
from jax.experimental.pallas import tpu as pltpu


def _round_up(a, m):
    return ((a + m - 1) // m) * m


# ---------------------------------------------------------------------------
# Fused kernel (layer loop unrolled at trace time)
# ---------------------------------------------------------------------------
def _make_fused_critic_kernel(n_hidden, compute_dtype):
    """Kernel: CLayer(d_in->128) + n_hidden CLayer(128->128) + Linear(128->256)."""

    def _ln_relu(y, gamma, beta):
        # torch.nn.LayerNorm: biased variance, eps=1e-5 inside rsqrt.
        # One-pass stats: var = E[y^2] - E[y]^2 (clamped), both reductions off
        # the same live y.
        s1 = jnp.mean(y, axis=-1, keepdims=True)
        s2 = jnp.mean(y * y, axis=-1, keepdims=True)
        var = jnp.maximum(s2 - s1 * s1, 0.0)
        y_hat = (y - s1) * jax.lax.rsqrt(var + 1e-5)
        return jnp.maximum(y_hat * gamma + beta, 0.0)

    def kernel(xc_ref, w0_ref, p0_ref, *rest):
        # ref layout:
        #   xc_ref : (tb, d_in)          concatenated [x, context] tile
        #   w0_ref : (d_in, 128)         first-layer weight
        #   p0_ref : (3, 128)            first-layer [bias; gamma; beta]
        #   ws_ref : (n_hidden, 128,128) stacked hidden weights   (if n_hidden>0)
        #   ps_ref : (n_hidden, 3, 128)  stacked hidden [b; g; bt] (if n_hidden>0)
        #   wout_ref : (128, 256), bout_ref : (1, 256)
        #   o_ref  : (tb, 256)
        if n_hidden > 0:
            ws_ref, ps_ref, wout_ref, bout_ref, o_ref = rest
        else:
            wout_ref, bout_ref, o_ref = rest

        # First CLayer (concat already folded into xc in the wrapper).
        h = jnp.dot(xc_ref[...].astype(compute_dtype), w0_ref[...],
                    preferred_element_type=jnp.float32)
        h = h + p0_ref[0:1, :]
        h = _ln_relu(h, p0_ref[1:2, :], p0_ref[2:3, :])

        # Hidden 128 -> 128 CLayers (unrolled; params indexed from stacked refs).
        for l in range(n_hidden):
            p_l = ps_ref[l]                                   # (3, 128) f32
            h = jnp.dot(h.astype(compute_dtype), ws_ref[l],
                        preferred_element_type=jnp.float32) + p_l[0:1, :]
            h = _ln_relu(h, p_l[1:2, :], p_l[2:3, :])

        # Output head: plain Linear(128, 256), lane-dense output tile.
        o_ref[...] = (jnp.dot(h.astype(compute_dtype), wout_ref[...],
                              preferred_element_type=jnp.float32)
                      + bout_ref[...])

    return kernel


# ---------------------------------------------------------------------------
# Pallas wrapper: single fused pallas_call, batch-tiled grid
# ---------------------------------------------------------------------------
def critic_forward_pallas(params, x, context, *, use_bf16=False, max_tile=512):
    x = x.astype(jnp.float32)
    context = context.astype(jnp.float32)
    # Fold torch.cat([x, context], dim=1) into a cheap (B, d_in) wrapper concat.
    xc = jnp.concatenate([x, context], axis=1)
    B, d_in = xc.shape

    (w0, b0, g0, bt0) = params["layers"][0]
    hidden = params["layers"][1:]
    n_hidden = len(hidden)
    w_out, b_out = params["out"]
    d_h = w0.shape[1]
    d_out = w_out.shape[1]

    compute_dtype = jnp.bfloat16 if use_bf16 else jnp.float32

    # Stack parameters into a handful of refs.
    p0 = jnp.concatenate([b0, g0, bt0], axis=0)                     # (3, d_h) f32
    w0c = w0.astype(compute_dtype)                                  # (d_in, d_h)
    woutc = w_out.astype(compute_dtype)                             # (d_h, d_out)
    if n_hidden:
        w_stack = jnp.stack([w for (w, _, _, _) in hidden]).astype(compute_dtype)
        p_stack = jnp.stack(
            [jnp.concatenate([b, g, bt], axis=0) for (_, b, g, bt) in hidden])

    # Batch tile selection:
    #   * never degenerate to tb = B for large batches,
    #   * >= 2 grid steps for moderate B (v7x dual-TC via "parallel"),
    #   * cap at max_tile (512 default: safe on v5e's 16 MiB scoped VMEM).
    half = _round_up(pl.cdiv(B, 2), 8)
    tb = B if half >= B else min(max_tile, half)
    grid = (pl.cdiv(B, tb),)   # Pallas masks the ragged last block.

    def _rows(shape):
        return pl.BlockSpec(shape, lambda i: (i, 0))

    def _pinned(shape):
        # Same block every grid step -> stays resident in VMEM.
        return pl.BlockSpec(tuple(shape), lambda i: (0,) * len(shape))

    in_arrays = [xc, w0c, p0]
    in_specs = [_rows((tb, d_in)), _pinned(w0c.shape), _pinned(p0.shape)]
    if n_hidden:
        in_arrays += [w_stack, p_stack]
        in_specs += [_pinned(w_stack.shape), _pinned(p_stack.shape)]
    in_arrays += [woutc, b_out]
    in_specs += [_pinned(woutc.shape), _pinned(b_out.shape)]

    # Advisory cost estimate so XLA can schedule/overlap this small custom call.
    flops = 2 * B * (d_in * d_h + n_hidden * d_h * d_h + d_h * d_out)
    param_bytes = sum(int(a.size) * a.dtype.itemsize for a in in_arrays[1:])
    cost = pl.CostEstimate(
        flops=flops,
        transcendentals=B * (n_hidden + 1),                   # one rsqrt / row / LN
        bytes_accessed=int(xc.size) * 4 + B * d_out * 4 + param_bytes,
    )

    kernel = _make_fused_critic_kernel(n_hidden, compute_dtype)

    return pl.pallas_call(
        kernel,
        out_shape=jax.ShapeDtypeStruct((B, d_out), jnp.float32),
        grid=grid,
        in_specs=in_specs,
        out_specs=_rows((tb, d_out)),
        compiler_params=pltpu.CompilerParams(
            # Batch tiles are independent -> parallel (v7x can split across TCs).
            dimension_semantics=("parallel",)
        ),
        cost_estimate=cost,
    )(*in_arrays)


critic_forward = jax.jit(critic_forward_pallas,
                         static_argnames=("use_bf16", "max_tile"))


# ---------------------------------------------------------------------------
# Parameter init (deterministic; mirrors nn.Linear / nn.LayerNorm shapes)
# ---------------------------------------------------------------------------
def _init_linear(key, d_in, d_out):
    """PyTorch-style uniform(-1/sqrt(d_in), 1/sqrt(d_in)) init."""
    kw, kb = jax.random.split(key)
    bound = 1.0 / jnp.sqrt(jnp.float32(d_in))
    w = jax.random.uniform(kw, (d_in, d_out), jnp.float32, -bound, bound)
    b = jax.random.uniform(kb, (1, d_out), jnp.float32, -bound, bound)
    return w, b


def init_critic_params(key, data_dim, context_dim, nlayers):
    dimslist = [[data_dim + context_dim, 128]]
    dimslist.extend([[128, 128] for _ in range(nlayers - 2)])

    params = {"layers": []}
    keys = jax.random.split(key, len(dimslist) + 1)
    for k, (d_in, d_out) in zip(keys[:-1], dimslist):
        w, b = _init_linear(k, d_in, d_out)
        gamma = jnp.ones((1, d_out), jnp.float32)   # LayerNorm weight
        beta = jnp.zeros((1, d_out), jnp.float32)   # LayerNorm bias
        params["layers"].append((w, b, gamma, beta))

    w_out, b_out = _init_linear(keys[-1], 128, 256)
    params["out"] = (w_out, b_out)
    return params


# ---------------------------------------------------------------------------
# Pure-JAX reference (mirrors PyTorch Critic.forward) for sanity checks
# ---------------------------------------------------------------------------
def critic_forward_ref(params, x, context):
    h = jnp.concatenate(
        [x.astype(jnp.float32), context.astype(jnp.float32)], axis=1
    )
    for (w, b, gamma, beta) in params["layers"]:
        y = h @ w + b
        mean = jnp.mean(y, axis=-1, keepdims=True)
        var = jnp.mean((y - mean) ** 2, axis=-1, keepdims=True)
        y = (y - mean) * jax.lax.rsqrt(var + 1e-5) * gamma + beta
        h = jnp.maximum(y, 0.0)
    w_out, b_out = params["out"]
    return h @ w_out + b_out


# TODO(synk): Critic.get_activations (returning a list of intermediate
# activations) is not exposed; only the forward pass is fused into the kernel.

if __name__ == "__main__":
    # Small config: (data_dim + context_dim) -> 128 -> 128 -> 128 -> 256
    batch = 8
    data_dim = 6
    context_dim = 2
    nlayers = 4   # -> 3 CLayer blocks + output Linear(128, 256)

    key = jax.random.PRNGKey(0)
    k_params, k_x, k_c, k_x2, k_c2 = jax.random.split(key, 5)

    params = init_critic_params(k_params, data_dim, context_dim, nlayers)
    x = jax.random.normal(k_x, (batch, data_dim), jnp.float32)
    context = jax.random.normal(k_c, (batch, context_dim), jnp.float32)

    # f32 path: exact-ish match vs. the reference.
    out = jax.block_until_ready(critic_forward(params, x, context))
    ref = critic_forward_ref(params, x, context)
    assert out.shape == (batch, 256), out.shape
    assert jnp.allclose(out, ref, atol=1e-4, rtol=1e-4), "f32 mismatch vs reference"

    # Multi-tile / ragged-batch path (grid > 1, masked last block).
    x2 = jax.random.normal(k_x2, (100, data_dim), jnp.float32)
    c2 = jax.random.normal(k_c2, (100, context_dim), jnp.float32)
    out2 = jax.block_until_ready(critic_forward(params, x2, c2))
    ref2 = critic_forward_ref(params, x2, c2)
    assert out2.shape == (100, 256), out2.shape
    assert jnp.allclose(out2, ref2, atol=1e-4, rtol=1e-4), "tiled mismatch vs reference"

    # Accuracy-gated bf16 fast path (looser tolerance by construction).
    out_bf16 = jax.block_until_ready(critic_forward(params, x, context, use_bf16=True))
    assert out_bf16.shape == (batch, 256), out_bf16.shape
    assert jnp.allclose(out_bf16, ref, atol=1e-1, rtol=1e-1), "bf16 path diverged"

    print("KERNEL_OK")
</pallas_src>

<mosaic_0001>
module attributes {stable_mosaic.version = 11 : i64} {
  func.func @kernel(%arg0: i32, %arg1: memref<8x8xf32, #tpu.memory_space<vmem>>, %arg2: memref<8x128xf32, #tpu.memory_space<vmem>>, %arg3: memref<3x128xf32, #tpu.memory_space<vmem>>, %arg4: memref<2x128x128xf32, #tpu.memory_space<vmem>>, %arg5: memref<2x3x128xf32, #tpu.memory_space<vmem>>, %arg6: memref<128x256xf32, #tpu.memory_space<vmem>>, %arg7: memref<1x256xf32, #tpu.memory_space<vmem>>, %arg8: memref<8x256xf32, #tpu.memory_space<vmem>>) attributes {dimension_semantics = [#tpu.dimension_semantics<parallel>], iteration_bounds = array<i64: 1>, scalar_prefetch = 0 : i64, scratch_operands = 0 : i64, tpu.core_type = #tpu.core_type<tc>, window_params = [{transform_indices = @transform_0, window_bounds = array<i64: 8, 8>}, {pipeline_mode = #tpu.pipeline_mode<synchronous>, transform_indices = @transform_1, window_bounds = array<i64: 8, 128>}, {pipeline_mode = #tpu.pipeline_mode<synchronous>, transform_indices = @transform_2, window_bounds = array<i64: 3, 128>}, {pipeline_mode = #tpu.pipeline_mode<synchronous>, transform_indices = @transform_3, window_bounds = array<i64: 2, 128, 128>}, {pipeline_mode = #tpu.pipeline_mode<synchronous>, transform_indices = @transform_4, window_bounds = array<i64: 2, 3, 128>}, {pipeline_mode = #tpu.pipeline_mode<synchronous>, transform_indices = @transform_5, window_bounds = array<i64: 128, 256>}, {pipeline_mode = #tpu.pipeline_mode<synchronous>, transform_indices = @transform_6, window_bounds = array<i64: 1, 256>}, {transform_indices = @transform_7, window_bounds = array<i64: 8, 256>}]} {
    %c0 = arith.constant 0 : index
    %c0_0 = arith.constant 0 : index
    %0 = vector.load %arg1[%c0, %c0_0] : memref<8x8xf32, #tpu.memory_space<vmem>>, vector<8x8xf32>
    %c0_1 = arith.constant 0 : index
    %c0_2 = arith.constant 0 : index
    %1 = vector.load %arg2[%c0_1, %c0_2] : memref<8x128xf32, #tpu.memory_space<vmem>>, vector<8x128xf32>
    %cst = arith.constant dense<0.000000e+00> : vector<8x128xf32>
    %2 = tpu.matmul %0, %1, %cst {dimension_numbers = #tpu.dot_dimension_numbers<[1], [0], [0], [1], [0, 0, 1, 1], [], []>} : vector<8x8xf32>, vector<8x128xf32>, vector<8x128xf32> -> vector<8x128xf32>
    %c0_3 = arith.constant 0 : index
    %c0_4 = arith.constant 0 : index
    %3 = vector.load %arg3[%c0_3, %c0_4] : memref<3x128xf32, #tpu.memory_space<vmem>>, vector<1x128xf32>
    %4 = vector.broadcast %3 : vector<1x128xf32> to vector<8x128xf32>
    %5 = arith.addf %2, %4 : vector<8x128xf32>
    %c1 = arith.constant 1 : index
    %c0_5 = arith.constant 0 : index
    %6 = vector.load %arg3[%c1, %c0_5] : memref<3x128xf32, #tpu.memory_space<vmem>>, vector<1x128xf32>
    %c2 = arith.constant 2 : index
    %c0_6 = arith.constant 0 : index
    %7 = vector.load %arg3[%c2, %c0_6] : memref<3x128xf32, #tpu.memory_space<vmem>>, vector<1x128xf32>
    %cst_7 = arith.constant dense<0.000000e+00> : vector<8xf32>
    %8 = vector.multi_reduction <add>, %5, %cst_7 [1] : vector<8x128xf32> to vector<8xf32>
    %9 = vector.shape_cast %8 : vector<8xf32> to vector<8x1xf32>
    %cst_8 = arith.constant 1.280000e+02 : f32
    %10 = vector.broadcast %cst_8 : f32 to vector<8x1xf32>
    %11 = arith.divf %9, %10 : vector<8x1xf32>
    %12 = arith.mulf %5, %5 : vector<8x128xf32>
    %cst_9 = arith.constant dense<0.000000e+00> : vector<8xf32>
    %13 = vector.multi_reduction <add>, %12, %cst_9 [1] : vector<8x128xf32> to vector<8xf32>
    %14 = vector.shape_cast %13 : vector<8xf32> to vector<8x1xf32>
    %cst_10 = arith.constant 1.280000e+02 : f32
    %15 = vector.broadcast %cst_10 : f32 to vector<8x1xf32>
    %16 = arith.divf %14, %15 : vector<8x1xf32>
    %17 = arith.mulf %11, %11 : vector<8x1xf32>
    %18 = arith.subf %16, %17 : vector<8x1xf32>
    %cst_11 = arith.constant 0.000000e+00 : f32
    %19 = vector.broadcast %cst_11 : f32 to vector<8x1xf32>
    %20 = arith.maximumf %18, %19 : vector<8x1xf32>
    %21 = vector.broadcast %11 : vector<8x1xf32> to vector<8x128xf32>
    %22 = arith.subf %5, %21 : vector<8x128xf32>
    %cst_12 = arith.constant 9.99999974E-6 : f32
    %23 = vector.broadcast %cst_12 : f32 to vector<8x1xf32>
    %24 = arith.addf %20, %23 : vector<8x1xf32>
    %25 = math.rsqrt %24 : vector<8x1xf32>
    %26 = vector.broadcast %25 : vector<8x1xf32> to vector<8x128xf32>
    %27 = arith.mulf %22, %26 : vector<8x128xf32>
    %28 = vector.broadcast %6 : vector<1x128xf32> to vector<8x128xf32>
    %29 = arith.mulf %27, %28 : vector<8x128xf32>
    %30 = vector.broadcast %7 : vector<1x128xf32> to vector<8x128xf32>
    %31 = arith.addf %29, %30 : vector<8x128xf32>
    %cst_13 = arith.constant 0.000000e+00 : f32
    %32 = vector.broadcast %cst_13 : f32 to vector<8x128xf32>
    %33 = arith.maximumf %31, %32 : vector<8x128xf32>
    %c0_14 = arith.constant 0 : index
    %c0_15 = arith.constant 0 : index
    %c0_16 = arith.constant 0 : index
    %34 = vector.load %arg5[%c0_14, %c0_15, %c0_16] : memref<2x3x128xf32, #tpu.memory_space<vmem>>, vector<1x3x128xf32>
    %35 = vector.shape_cast %34 : vector<1x3x128xf32> to vector<3x128xf32>
    %c0_17 = arith.constant 0 : index
    %c0_18 = arith.constant 0 : index
    %c0_19 = arith.constant 0 : index
    %36 = vector.load %arg4[%c0_17, %c0_18, %c0_19] : memref<2x128x128xf32, #tpu.memory_space<vmem>>, vector<1x128x128xf32>
    %37 = vector.shape_cast %36 : vector<1x128x128xf32> to vector<128x128xf32>
    %cst_20 = arith.constant dense<0.000000e+00> : vector<8x128xf32>
    %38 = tpu.matmul %33, %37, %cst_20 {dimension_numbers = #tpu.dot_dimension_numbers<[1], [0], [0], [1], [0, 0, 1, 1], [], []>} : vector<8x128xf32>, vector<128x128xf32>, vector<8x128xf32> -> vector<8x128xf32>
    %39 = vector.extract_strided_slice %35 {offsets = [0, 0], sizes = [1, 128], strides = [1, 1]} : vector<3x128xf32> to vector<1x128xf32>
    %40 = vector.broadcast %39 : vector<1x128xf32> to vector<8x128xf32>
    %41 = arith.addf %38, %40 : vector<8x128xf32>
    %42 = vector.extract_strided_slice %35 {offsets = [1, 0], sizes = [1, 128], strides = [1, 1]} : vector<3x128xf32> to vector<1x128xf32>
    %43 = vector.extract_strided_slice %35 {offsets = [2, 0], sizes = [1, 128], strides = [1, 1]} : vector<3x128xf32> to vector<1x128xf32>
    %cst_21 = arith.constant dense<0.000000e+00> : vector<8xf32>
    %44 = vector.multi_reduction <add>, %41, %cst_21 [1] : vector<8x128xf32> to vector<8xf32>
    %45 = vector.shape_cast %44 : vector<8xf32> to vector<8x1xf32>
    %cst_22 = arith.constant 1.280000e+02 : f32
    %46 = vector.broadcast %cst_22 : f32 to vector<8x1xf32>
    %47 = arith.divf %45, %46 : vector<8x1xf32>
    %48 = arith.mulf %41, %41 : vector<8x128xf32>
    %cst_23 = arith.constant dense<0.000000e+00> : vector<8xf32>
    %49 = vector.multi_reduction <add>, %48, %cst_23 [1] : vector<8x128xf32> to vector<8xf32>
    %50 = vector.shape_cast %49 : vector<8xf32> to vector<8x1xf32>
    %cst_24 = arith.constant 1.280000e+02 : f32
    %51 = vector.broadcast %cst_24 : f32 to vector<8x1xf32>
    %52 = arith.divf %50, %51 : vector<8x1xf32>
    %53 = arith.mulf %47, %47 : vector<8x1xf32>
    %54 = arith.subf %52, %53 : vector<8x1xf32>
    %cst_25 = arith.constant 0.000000e+00 : f32
    %55 = vector.broadcast %cst_25 : f32 to vector<8x1xf32>
    %56 = arith.maximumf %54, %55 : vector<8x1xf32>
    %57 = vector.broadcast %47 : vector<8x1xf32> to vector<8x128xf32>
    %58 = arith.subf %41, %57 : vector<8x128xf32>
    %cst_26 = arith.constant 9.99999974E-6 : f32
    %59 = vector.broadcast %cst_26 : f32 to vector<8x1xf32>
    %60 = arith.addf %56, %59 : vector<8x1xf32>
    %61 = math.rsqrt %60 : vector<8x1xf32>
    %62 = vector.broadcast %61 : vector<8x1xf32> to vector<8x128xf32>
    %63 = arith.mulf %58, %62 : vector<8x128xf32>
    %64 = vector.broadcast %42 : vector<1x128xf32> to vector<8x128xf32>
    %65 = arith.mulf %63, %64 : vector<8x128xf32>
    %66 = vector.broadcast %43 : vector<1x128xf32> to vector<8x128xf32>
    %67 = arith.addf %65, %66 : vector<8x128xf32>
    %cst_27 = arith.constant 0.000000e+00 : f32
    %68 = vector.broadcast %cst_27 : f32 to vector<8x128xf32>
    %69 = arith.maximumf %67, %68 : vector<8x128xf32>
    %c1_28 = arith.constant 1 : index
    %c0_29 = arith.constant 0 : index
    %c0_30 = arith.constant 0 : index
    %70 = vector.load %arg5[%c1_28, %c0_29, %c0_30] : memref<2x3x128xf32, #tpu.memory_space<vmem>>, vector<1x3x128xf32>
    %71 = vector.shape_cast %70 : vector<1x3x128xf32> to vector<3x128xf32>
    %c1_31 = arith.constant 1 : index
    %c0_32 = arith.constant 0 : index
    %c0_33 = arith.constant 0 : index
    %72 = vector.load %arg4[%c1_31, %c0_32, %c0_33] : memref<2x128x128xf32, #tpu.memory_space<vmem>>, vector<1x128x128xf32>
    %73 = vector.shape_cast %72 : vector<1x128x128xf32> to vector<128x128xf32>
    %cst_34 = arith.constant dense<0.000000e+00> : vector<8x128xf32>
    %74 = tpu.matmul %69, %73, %cst_34 {dimension_numbers = #tpu.dot_dimension_numbers<[1], [0], [0], [1], [0, 0, 1, 1], [], []>} : vector<8x128xf32>, vector<128x128xf32>, vector<8x128xf32> -> vector<8x128xf32>
    %75 = vector.extract_strided_slice %71 {offsets = [0, 0], sizes = [1, 128], strides = [1, 1]} : vector<3x128xf32> to vector<1x128xf32>
    %76 = vector.broadcast %75 : vector<1x128xf32> to vector<8x128xf32>
    %77 = arith.addf %74, %76 : vector<8x128xf32>
    %78 = vector.extract_strided_slice %71 {offsets = [1, 0], sizes = [1, 128], strides = [1, 1]} : vector<3x128xf32> to vector<1x128xf32>
    %79 = vector.extract_strided_slice %71 {offsets = [2, 0], sizes = [1, 128], strides = [1, 1]} : vector<3x128xf32> to vector<1x128xf32>
    %cst_35 = arith.constant dense<0.000000e+00> : vector<8xf32>
    %80 = vector.multi_reduction <add>, %77, %cst_35 [1] : vector<8x128xf32> to vector<8xf32>
    %81 = vector.shape_cast %80 : vector<8xf32> to vector<8x1xf32>
    %cst_36 = arith.constant 1.280000e+02 : f32
    %82 = vector.broadcast %cst_36 : f32 to vector<8x1xf32>
    %83 = arith.divf %81, %82 : vector<8x1xf32>
    %84 = arith.mulf %77, %77 : vector<8x128xf32>
    %cst_37 = arith.constant dense<0.000000e+00> : vector<8xf32>
    %85 = vector.multi_reduction <add>, %84, %cst_37 [1] : vector<8x128xf32> to vector<8xf32>
    %86 = vector.shape_cast %85 : vector<8xf32> to vector<8x1xf32>
    %cst_38 = arith.constant 1.280000e+02 : f32
    %87 = vector.broadcast %cst_38 : f32 to vector<8x1xf32>
    %88 = arith.divf %86, %87 : vector<8x1xf32>
    %89 = arith.mulf %83, %83 : vector<8x1xf32>
    %90 = arith.subf %88, %89 : vector<8x1xf32>
    %cst_39 = arith.constant 0.000000e+00 : f32
    %91 = vector.broadcast %cst_39 : f32 to vector<8x1xf32>
    %92 = arith.maximumf %90, %91 : vector<8x1xf32>
    %93 = vector.broadcast %83 : vector<8x1xf32> to vector<8x128xf32>
    %94 = arith.subf %77, %93 : vector<8x128xf32>
    %cst_40 = arith.constant 9.99999974E-6 : f32
    %95 = vector.broadcast %cst_40 : f32 to vector<8x1xf32>
    %96 = arith.addf %92, %95 : vector<8x1xf32>
    %97 = math.rsqrt %96 : vector<8x1xf32>
    %98 = vector.broadcast %97 : vector<8x1xf32> to vector<8x128xf32>
    %99 = arith.mulf %94, %98 : vector<8x128xf32>
    %100 = vector.broadcast %78 : vector<1x128xf32> to vector<8x128xf32>
    %101 = arith.mulf %99, %100 : vector<8x128xf32>
    %102 = vector.broadcast %79 : vector<1x128xf32> to vector<8x128xf32>
    %103 = arith.addf %101, %102 : vector<8x128xf32>
    %cst_41 = arith.constant 0.000000e+00 : f32
    %104 = vector.broadcast %cst_41 : f32 to vector<8x128xf32>
    %105 = arith.maximumf %103, %104 : vector<8x128xf32>
    %c0_42 = arith.constant 0 : index
    %c0_43 = arith.constant 0 : index
    %106 = vector.load %arg6[%c0_42, %c0_43] : memref<128x256xf32, #tpu.memory_space<vmem>>, vector<128x256xf32>
    %cst_44 = arith.constant dense<0.000000e+00> : vector<8x256xf32>
    %107 = tpu.matmul %105, %106, %cst_44 {dimension_numbers = #tpu.dot_dimension_numbers<[1], [0], [0], [1], [0, 0, 1, 1], [], []>} : vector<8x128xf32>, vector<128x256xf32>, vector<8x256xf32> -> vector<8x256xf32>
    %c0_45 = arith.constant 0 : index
    %c0_46 = arith.constant 0 : index
    %108 = vector.load %arg7[%c0_45, %c0_46] : memref<1x256xf32, #tpu.memory_space<vmem>>, vector<1x256xf32>
    %109 = vector.broadcast %108 : vector<1x256xf32> to vector<8x256xf32>
    %110 = arith.addf %107, %109 : vector<8x256xf32>
    %c0_47 = arith.constant 0 : index
    %c0_48 = arith.constant 0 : index
    %111 = vector.load %arg8[%c0_47, %c0_48] : memref<8x256xf32, #tpu.memory_space<vmem>>, vector<8x256xf32>
    tpu.vector_store %arg8[%c0_47, %c0_48], %110 {strides = array<i32>} : memref<8x256xf32, #tpu.memory_space<vmem>>, vector<8x256xf32>,
    return
  }
  func.func @transform_0(%arg0: i32) -> (i32, i32) {
    %c0_i32 = arith.constant 0 : i32
    %c0_i32_0 = arith.constant 0 : i32
    return %arg0, %c0_i32 : i32, i32
  }
  func.func @transform_1(%arg0: i32) -> (i32, i32) {
    %c0_i32 = arith.constant 0 : i32
    %c0_i32_0 = arith.constant 0 : i32
    %c0_i32_1 = arith.constant 0 : i32
    return %c0_i32, %c0_i32_0 : i32, i32
  }
  func.func @transform_2(%arg0: i32) -> (i32, i32) {
    %c0_i32 = arith.constant 0 : i32
    %c0_i32_0 = arith.constant 0 : i32
    %c0_i32_1 = arith.constant 0 : i32
    return %c0_i32, %c0_i32_0 : i32, i32
  }
  func.func @transform_3(%arg0: i32) -> (i32, i32, i32) {
    %c0_i32 = arith.constant 0 : i32
    %c0_i32_0 = arith.constant 0 : i32
    %c0_i32_1 = arith.constant 0 : i32
    %c0_i32_2 = arith.constant 0 : i32
    return %c0_i32, %c0_i32_0, %c0_i32_1 : i32, i32, i32
  }
  func.func @transform_4(%arg0: i32) -> (i32, i32, i32) {
    %c0_i32 = arith.constant 0 : i32
    %c0_i32_0 = arith.constant 0 : i32
    %c0_i32_1 = arith.constant 0 : i32
    %c0_i32_2 = arith.constant 0 : i32
    return %c0_i32, %c0_i32_0, %c0_i32_1 : i32, i32, i32
  }
  func.func @transform_5(%arg0: i32) -> (i32, i32) {
    %c0_i32 = arith.constant 0 : i32
    %c0_i32_0 = arith.constant 0 : i32
    %c0_i32_1 = arith.constant 0 : i32
    return %c0_i32, %c0_i32_0 : i32, i32
  }
  func.func @transform_6(%arg0: i32) -> (i32, i32) {
    %c0_i32 = arith.constant 0 : i32
    %c0_i32_0 = arith.constant 0 : i32
    %c0_i32_1 = arith.constant 0 : i32
    return %c0_i32, %c0_i32_0 : i32, i32
  }
  func.func @transform_7(%arg0: i32) -> (i32, i32) {
    %c0_i32 = arith.constant 0 : i32
    %c0_i32_0 = arith.constant 0 : i32
    return %arg0, %c0_i32 : i32, i32
  }
}

</mosaic_0001>

<bundles_post_ra>
// kernel: critic_forward_pallas.1
= control target key start
LH: loop header
LB: loop body
LE: loop exit
PB: predicated region body
PF: predicated region fallthrough
CT: control target
= control target key end

     0   :  { %vm34_vm0 = vcmask 64512   ;;  %v747_v2 = vmov 0.0   ;;  %vm748_vm1 = vmmov 0   ;;  %s1075_s0 = inlined_call_operand.vmem [shape: f32[8,8], index: 0, kind: input, shape index: {}]   ;;  %s1076_s1 = inlined_call_operand.vmem [shape: f32[8,128], index: 1, kind: input, shape index: {}]   ;;  %s1077_s2 = inlined_call_operand.vmem [shape: f32[3,128], index: 2, kind: input, shape index: {}]   ;;  %s1078_s3 = inlined_call_operand.vmem [shape: f32[2,128,128], index: 3, kind: input, shape index: {}]   ;;  %s1079_s4 = inlined_call_operand.vmem [shape: f32[2,3,128], index: 4, kind: input, shape index: {}]   ;;  %s1080_s5 = inlined_call_operand.vmem [shape: f32[128,256], index: 5, kind: input, shape index: {}]   ;;  %s1081_s6 = inlined_call_operand.vmem [shape: f32[1,256], index: 6, kind: input, shape index: {}]   ;;  %s1082_s7 = inlined_call_operand.hbm [shape: f32[8,256], index: 7, kind: output, shape index: {}]  }
   0x1   :  { %v28_v0 = vld [vmem:[%s1076_s1] sm:$0xff]  ;;  %558 = vmatprep.subr.mxu0 %v747_v2  ;;  %560 = vmatprep.mubr.msk.f32.mxu0 %vm748_vm1, %v747_v2 }
   0x2   :  { %v27_v1 = vld [vmem:[%s1075_s0] sm:$0xff] }
   0x3   :  { %12 = vsyncpa [#allocation3], 0  ;;  %559 = vmatpush3.msra.mxu0 %v28_v0  ;;  %595 = vmatprep.mubr.msk.f32.mxu1 %vm748_vm1, %v747_v2  ;;  %v749_v3 = vmov 0.0|0.0   ;;  %v501_v4 = vld [vmem:[%s1077_s2] ss:$0 sm:$0xff]  ;;  %v138_v10 = vld [vmem:[%s1078_s3 + $0x8] sm:$0xff]  ;;  %v153_v49 = vlaneseq }
   0x4   :  { %561 = vmatmul.mubr.msk.f32.vlgmr.msra.gmra.mrb[0].mxu0 %vm34_vm0, %v27_v1  ;;  %633 = vmatprep.subr.bf16.mxu1 %v749_v3  ;;  %v137_v9 = vld [vmem:[%s1078_s3] sm:$0xff]  ;;  %v139_v12 = vld [vmem:[%s1078_s3 + $0x10] sm:$0xff]  ;;  %v140_v13 = vld [vmem:[%s1078_s3 + $0x18] sm:$0xff]  ;;  %s750_s8 = smov [#allocation2]  }
   0x5   :  { %630 = vmatprep.mubr.msk.f32.mxu0 %vm748_vm1, %v747_v2  ;;  %657 = vmatprep.subr.bf16.mxu0 %v749_v3  ;;  %v634_v11 = vpack.c.bf16 %v138_v10, %v137_v9  ;;  %v637_v14 = vpack.c.bf16 %v140_v13, %v139_v12  ;;  %v141_v15 = vld [vmem:[%s1078_s3 + $0x20] sm:$0xff]  ;;  %v142_v16 = vld [vmem:[%s1078_s3 + $0x28] sm:$0xff]  ;;  %v143_v18 = vld [vmem:[%s1078_s3 + $0x30] sm:$0xff]  ;;  %v868_v50 = vshrl.u32 %v153_v49, 7  ;;  %s493_s9 = sshll.u32 %s750_s8, 4  ;;  %s494_s9 = int_to_ptr.vmem [resolvable:$true] %s493_s9 }
   0x6   :  { %v640_v17 = vpack.c.bf16 %v142_v16, %v141_v15  ;;  %v144_v19 = vld [vmem:[%s1078_s3 + $0x38] sm:$0xff]  ;;  %v145_v21 = vld [vmem:[%s1078_s3 + $0x40] sm:$0xff]  ;;  %v146_v22 = vld [vmem:[%s1078_s3 + $0x48] sm:$0xff]  ;;  %p728_p1 = scmp.lt.s32.totalorder %s494_s9, %s494_s9 }
   0x7   :  { %635 = vmatpush3.bf16.msra.mxu1 %v634_v11  ;;  %v643_v20 = vpack.c.bf16 %v144_v19, %v143_v18  ;;  %v646_v23 = vpack.c.bf16 %v146_v22, %v145_v21  ;;  %v147_v24 = vld [vmem:[%s1078_s3 + $0x50] sm:$0xff]  ;;  %v148_v25 = vld [vmem:[%s1078_s3 + $0x58] sm:$0xff]  ;;  %v149_v27 = vld [vmem:[%s1078_s3 + $0x60] sm:$0xff]  ;;  %v871_v51 = vsub.s32 0, %v868_v50 }
   0x8   :  { %636 = vmatprep.subr.bf16.mxu1 %v749_v3  ;;  %v649_v26 = vpack.c.bf16 %v148_v25, %v147_v24  ;;  %v150_v28 = vld [vmem:[%s1078_s3 + $0x68] sm:$0xff]  ;;  %v151_v30 = vld [vmem:[%s1078_s3 + $0x70] sm:$0xff]  ;;  %v152_v31 = vld [vmem:[%s1078_s3 + $0x78] sm:$0xff] }
   0x9   :  { %v652_v29 = vpack.c.bf16 %v150_v28, %v149_v27  ;;  %v655_v32 = vpack.c.bf16 %v152_v31, %v151_v30  ;;  %v503_v43 = vld [vmem:[%s1077_s2 + $0x1] ss:$0 sm:$0xff]  ;;  %v504_v45 = vld [vmem:[%s1077_s2 + $0x2] ss:$0 sm:$0xff]  ;;  %v507_v59 = vld [vmem:[%s1078_s3 + $0x88] sm:$0xff]  ;;  %v936_v27 = vsub.s32 1, %v868_v50 }
   0xa   :  { %v876_v52 = vld [vmem:[%s1079_s4] sm:$0x7]  ;;  %v508_v61 = vld [vmem:[%s1078_s3 + $0x90] sm:$0xff]  ;;  %v509_v62 = vld [vmem:[%s1078_s3 + $0x98] sm:$0xff]  ;;  %v248_v28 = vsub.s32 2, %v868_v50 }
   0xb   :  { %638 = vmatpush3.bf16.msra.mxu1 %v637_v14  ;;  %v156_v53 = vrot.slane %v876_v52, %v871_v51  ;;  %v506_v58 = vld [vmem:[%s1078_s3 + $0x80] sm:$0xff]  ;;  %v661_v63 = vpack.c.bf16 %v509_v62, %v508_v61  ;;  %v511_v1 = vld [vmem:[%s1078_s3 + $0xa8] sm:$0xff]  ;;  %v516_v10 = vld [vmem:[%s1078_s3 + $0xd0] sm:$0xff] }
   0xc   :  { %639 = vmatprep.subr.bf16.mxu1 %v749_v3  ;;  %v658_v60 = vpack.c.bf16 %v507_v59, %v506_v58  ;;  %v510_v0 = vld [vmem:[%s1078_s3 + $0xa0] sm:$0xff]  ;;  %v517_v11 = vld [vmem:[%s1078_s3 + $0xd8] sm:$0xff]  ;;  %v519_v14 = vld [vmem:[%s1078_s3 + $0xe8] sm:$0xff]  ;;  %v249_v31 = vrot.slane %v876_v52, %v248_v28 }
   0xd   :  { %v673_v12 = vpack.c.bf16 %v517_v11, %v516_v10  ;;  %v518_v13 = vld [vmem:[%s1078_s3 + $0xe0] sm:$0xff]  ;;  %v520_v16 = vld [vmem:[%s1078_s3 + $0xf0] sm:$0xff]  ;;  %v377_v49 = vld [vmem:[%s1080_s5 + $0x38] sm:$0xff] }
   0xe   :  { %659 = vmatpush3.bf16.msra.mxu0 %v658_v60  ;;  %v676_v15 = vpack.c.bf16 %v519_v14, %v518_v13  ;;  %v378_v59 = vld [vmem:[%s1080_s5 + $0x40] sm:$0xff]  ;;  %v380_v60 = vld [vmem:[%s1080_s5 + $0x50] sm:$0xff]  ;;  %v383_v62 = vld [vmem:[%s1080_s5 + $0x68] sm:$0xff] }
   0xf   :  { %641 = vmatpush3.bf16.msra.mxu1 %v640_v17  ;;  %660 = vmatprep.subr.bf16.mxu0 %v749_v3  ;;  %v521_v17 = vld [vmem:[%s1078_s3 + $0xf8] sm:$0xff]  ;;  %v691_v61 = vpack.c.bf16 %v380_v60, %v378_v59  ;;  %v391_v10 = vld [vmem:[%s1080_s5 + $0xa8] sm:$0xff]  ;;  %v390_v14 = vld [vmem:[%s1080_s5 + $0xa0] sm:$0xff] }
  0x10   :  { %642 = vmatprep.subr.bf16.mxu1 %v749_v3  ;;  %v679_v18 = vpack.c.bf16 %v521_v17, %v520_v16  ;;  %v393_v11 = vld [vmem:[%s1080_s5 + $0xb8] sm:$0xff]  ;;  %v395_v16 = vld [vmem:[%s1080_s5 + $0xc8] sm:$0xff] }
  0x11   :  { %v701_v13 = vpack.c.bf16 %v393_v11, %v391_v10  ;;  %v397_v17 = vld [vmem:[%s1080_s5 + $0xd8] sm:$0xff] }
  0x12   :  { %662 = vmatpush3.bf16.msra.mxu0 %v661_v63  ;;  %v385_v63 = vld [vmem:[%s1080_s5 + $0x78] sm:$0xff] }
  0x13   :  { %644 = vmatpush3.bf16.msra.mxu1 %v643_v20  ;;  %663 = vmatprep.subr.bf16.mxu0 %v749_v3 }
  0x14   :  { %645 = vmatprep.subr.bf16.mxu1 %v749_v3 }
  0x17   :  { %647 = vmatpush3.bf16.msra.mxu1 %v646_v23 }
  0x18   :  { %648 = vmatprep.subr.bf16.mxu1 %v749_v3 }
  0x1b   :  { %650 = vmatpush3.bf16.msra.mxu1 %v649_v26 }
  0x1c   :  { %651 = vmatprep.subr.bf16.mxu1 %v749_v3 }
  0x1f   :  { %653 = vmatpush3.bf16.msra.mxu1 %v652_v29  ;;  %v244_v29 = vrot.slane %v876_v52, %v936_v27 }
  0x20   :  { %654 = vmatprep.subr.bf16.mxu1 %v749_v3 }
  0x23   :  { %656 = vmatpush3.bf16.msra.mxu1 %v655_v32 }
  0xd7   :  { %v104_v5 = vpop.f32.mrb[0].mxu0 }
  0xd8   :  { %v105_v6 = vadd.f32 %v501_v4, %v104_v5  ;;  %v562_v7 = vpop.f32.mrb[1].mxu0  ;;  %v512_v4 = vld [vmem:[%s1078_s3 + $0xb0] sm:$0xff]  ;;  %v513_v5 = vld [vmem:[%s1078_s3 + $0xb8] sm:$0xff] }
  0xd9   :  { %v514_v7 = vld [vmem:[%s1078_s3 + $0xc0] sm:$0xff] }
  0xda   :  { %110 = vadd.xlane.f32.xlu0 %v105_v6  ;;  %v114_v8 = vmul.f32 %v105_v6, %v105_v6 }
  0xde   :  { %115 = vadd.xlane.f32.xlu0 %v114_v8  ;;  %v515_v8 = vld [vmem:[%s1078_s3 + $0xc8] sm:$0xff] }
  0xdf   :  { %v670_v9 = vpack.c.bf16 %v515_v8, %v514_v7  ;;  %v386_v7 = vld [vmem:[%s1080_s5 + $0x80] sm:$0xff] }
 0x167   :  { %v111_v33 = vpop.xlane.xlu0 %110 }
 0x168   :  { %v113_v34 = vmul.f32 0.0078125, %v111_v33 }
 0x16a   :  { %v118_v36 = vmul.f32 %v113_v34, %v113_v34  ;;  %v121_v41 = vsub.f32 %v105_v6, %v113_v34  ;;  %v667_v6 = vpack.c.bf16 %v513_v5, %v512_v4  ;;  %v387_v5 = vld [vmem:[%s1080_s5 + $0x88] sm:$0xff] }
 0x16b   :  { %v116_v35 = vpop.xlane.xlu0 %115 }
 0x16c   :  { %v117_v37 = vmul.f32 0.0078125, %v116_v35 }
 0x16e   :  { %v119_v38 = vsub.f32 %v117_v37, %v118_v36  ;;  %v371_v36 = vld [vmem:[%s1080_s5 + $0x8] sm:$0xff]  ;;  %v373_v37 = vld [vmem:[%s1080_s5 + $0x18] sm:$0xff] }
 0x170   :  { %v120_v39 = vmax.f32 %v119_v38, 0.0  ;;  %v370_v38 = vld [vmem:[%s1080_s5] sm:$0xff] }
 0x172   :  { %v122_v40 = vadd.f32 1e-05, %v120_v39  ;;  %v681_v39 = vpack.c.bf16 %v373_v37, %v371_v36 }
 0x174   :  { %717 = vrsqrt.f32 %v122_v40  ;;  %v372_v40 = vld [vmem:[%s1080_s5 + $0x10] sm:$0xff]  ;;  %682 = vmatprep.subr.bf16.mxu1 %v681_v39 }
 0x17e   :  { %v718_v42 = vpop.eup %717 }
 0x17f   :  { %v124_v44 = vmul.f32 %v718_v42, %v121_v41  ;;  %v683_v41 = vpack.c.bf16 %v372_v40, %v370_v38  ;;  %v959_v42 = vld [vmem:[%s1079_s4 + $0x4] sm:$0x7]  ;;  %s723_s4 = scalar_lea.vmem %s494_s9, 256 }
 0x180   :  { %v362_v38 = vrot.slane %v959_v42, %v936_v27  ;;  %p724_p0 = scmp.ne.s32.totalorder %s494_s9, %s723_s4  ;;  %p729_p2 = scmp.lt.s32.totalorder %s723_s4, %s723_s4 }
 0x181   :  { %v129_v46 = vmul.f32 %v503_v43, %v124_v44  ;;  %v274_v43 = vrot.slane %v959_v42, %v871_v51 }
 0x182   :  { %p730_p3 = por %p729_p2, %p728_p1 }
 0x183   :  { %v134_v47 = vadd.f32 %v504_v45, %v129_v46 }
 0x184   :  { %p731_p4 = pnand %p730_p3, %p724_p0 }
 0x185   :  { %v135_v48 = vmax.f32 %v134_v47, 0.0 }
 0x187   :  { %596 = vmatmul.mubr.f32.vlgmr.msra.gmra.mrb[0].mxu1 %v135_v48  ;;  %v375_v48 = vld [vmem:[%s1080_s5 + $0x28] sm:$0xff] }
 0x188   :  { %478 = vmatprep.mubr.f32.mxu1 %v747_v2  ;;  %v664_v2 = vpack.c.bf16 %v511_v1, %v510_v0  ;;  %684 = vmatpush1.bf16.msra.mxu1 %v683_v41  ;;  %v685_v52 = vpack.c.bf16 %v377_v49, %v375_v48  ;;  %v693_v0 = vpack.c.bf16 %v385_v63, %v383_v62  ;;  %v382_v1 = vld [vmem:[%s1080_s5 + $0x60] sm:$0xff] }
 0x189   :  { %v367_v41 = vrot.slane %v959_v42, %v248_v28  ;;  %v402_v48 = vld [vmem:[%s1081_s6] sm:$0x3] }
 0x18a   :  { %665 = vmatpush3.bf16.msra.mxu0 %v664_v2  ;;  %686 = vmatprep.subr.bf16.mxu1 %v685_v52  ;;  %v384_v2 = vld [vmem:[%s1080_s5 + $0x70] sm:$0xff]  ;;  %v407_v49 = vrot.slane %v402_v48, %v871_v51  ;;  %v411_v52 = vrot.slane %v402_v48, %v936_v27 }
 0x18b   :  { %666 = vmatprep.subr.bf16.mxu0 %v749_v3  ;;  %v695_v4 = vpack.c.bf16 %v384_v2, %v382_v1 }
 0x18e   :  { %668 = vmatpush3.bf16.msra.mxu0 %v667_v6  ;;  %v389_v6 = vld [vmem:[%s1080_s5 + $0x98] sm:$0xff] }
 0x18f   :  { %669 = vmatprep.subr.bf16.mxu0 %v749_v3  ;;  %v697_v8 = vpack.c.bf16 %v389_v6, %v387_v5 }
 0x192   :  { %671 = vmatpush3.bf16.msra.mxu0 %v670_v9  ;;  %v388_v9 = vld [vmem:[%s1080_s5 + $0x90] sm:$0xff] }
 0x193   :  { %672 = vmatprep.subr.bf16.mxu0 %v749_v3 }
 0x196   :  { %674 = vmatpush3.bf16.msra.mxu0 %v673_v12  ;;  %v699_v12 = vpack.c.bf16 %v388_v9, %v386_v7 }
 0x197   :  { %675 = vmatprep.subr.bf16.mxu0 %v749_v3 }
 0x19a   :  { %677 = vmatpush3.bf16.msra.mxu0 %v676_v15  ;;  %v392_v15 = vld [vmem:[%s1080_s5 + $0xb0] sm:$0xff] }
 0x19b   :  { %678 = vmatprep.subr.bf16.mxu0 %v749_v3 }
 0x19e   :  { %680 = vmatpush3.bf16.msra.mxu0 %v679_v18  ;;  %v703_v18 = vpack.c.bf16 %v392_v15, %v390_v14 }
 0x25a   :  { %v223_v54 = vpop.f32.mrb[0].mxu1 }
 0x25b   :  { %v224_v55 = vadd.f32 %v223_v54, %v156_v53  ;;  %v597_v56 = vpop.f32.mrb[1].mxu1  ;;  %v374_v53 = vld [vmem:[%s1080_s5 + $0x20] sm:$0xff]  ;;  %v376_v54 = vld [vmem:[%s1080_s5 + $0x30] sm:$0xff] }
 0x25c   :  { %v379_v56 = vld [vmem:[%s1080_s5 + $0x48] sm:$0xff] }
 0x25d   :  { %227 = vadd.xlane.f32.xlu1 %v224_v55  ;;  %v230_v57 = vmul.f32 %v224_v55, %v224_v55 }
 0x261   :  { %231 = vadd.xlane.f32.xlu1 %v230_v57  ;;  %v381_v57 = vld [vmem:[%s1080_s5 + $0x58] sm:$0xff] }
 0x262   :  { %v689_v58 = vpack.c.bf16 %v381_v57, %v379_v56 }
 0x2ea   :  { %v228_v19 = vpop.xlane.xlu1 %227 }
 0x2eb   :  { %v229_v20 = vmul.f32 0.0078125, %v228_v19  ;;  %v705_v19 = vpack.c.bf16 %v397_v17, %v395_v16 }
 0x2ed   :  { %v234_v22 = vmul.f32 %v229_v20, %v229_v20  ;;  %v237_v30 = vsub.f32 %v224_v55, %v229_v20  ;;  %v687_v55 = vpack.c.bf16 %v376_v54, %v374_v53  ;;  %v394_v20 = vld [vmem:[%s1080_s5 + $0xc0] sm:$0xff] }
 0x2ee   :  { %v232_v21 = vpop.xlane.xlu1 %231 }
 0x2ef   :  { %v233_v23 = vmul.f32 0.0078125, %v232_v21  ;;  %688 = vmatpush1.bf16.msra.mxu1 %v687_v55  ;;  %v396_v21 = vld [vmem:[%s1080_s5 + $0xd0] sm:$0xff] }
 0x2f0   :  { %690 = vmatprep.subr.bf16.mxu1 %v689_v58 }
 0x2f1   :  { %v235_v24 = vsub.f32 %v233_v23, %v234_v22  ;;  %v399_v22 = vld [vmem:[%s1080_s5 + $0xe8] sm:$0xff]  ;;  %v401_v23 = vld [vmem:[%s1080_s5 + $0xf8] sm:$0xff] }
 0x2f3   :  { %v236_v25 = vmax.f32 %v235_v24, 0.0  ;;  %692 = vmatpush1.bf16.msra.mxu1 %v691_v61  ;;  %v707_v24 = vpack.c.bf16 %v396_v21, %v394_v20 }
 0x2f4   :  { %694 = vmatprep.subr.bf16.mxu1 %v693_v0 }
 0x2f5   :  { %v238_v26 = vadd.f32 1e-05, %v236_v25  ;;  %v709_v25 = vpack.c.bf16 %v401_v23, %v399_v22 }
 0x2f7   :  { %719 = vrsqrt.f32 %v238_v26  ;;  %696 = vmatpush1.bf16.msra.mxu1 %v695_v4  ;;  %v398_v26 = vld [vmem:[%s1080_s5 + $0xe0] sm:$0xff] }
 0x2f8   :  { %698 = vmatprep.subr.bf16.mxu1 %v697_v8 }
 0x2fb   :  { %700 = vmatpush1.bf16.msra.mxu1 %v699_v12 }
 0x2fc   :  { %702 = vmatprep.subr.bf16.mxu1 %v701_v13 }
 0x2ff   :  { %704 = vmatpush1.bf16.msra.mxu1 %v703_v18 }
 0x300   :  { %706 = vmatprep.subr.bf16.mxu1 %v705_v19 }
 0x301   :  { %v720_v3 = vpop.eup %719 }
 0x302   :  { %v240_v32 = vmul.f32 %v720_v3, %v237_v30 }
 0x303   :  { %708 = vmatpush1.bf16.msra.mxu1 %v707_v24 }
 0x304   :  { %v245_v33 = vmul.f32 %v244_v29, %v240_v32  ;;  %v400_v29 = vld [vmem:[%s1080_s5 + $0xf0] sm:$0xff]  ;;  %710 = vmatprep.subr.bf16.mxu1 %v709_v25 }
 0x305   :  { %v711_v30 = vpack.c.bf16 %v400_v29, %v398_v26 }
 0x306   :  { %v250_v34 = vadd.f32 %v249_v31, %v245_v33 }
 0x307   :  { %712 = vmatpush1.bf16.msra.mxu1 %v711_v30 }
 0x308   :  { %v251_v35 = vmax.f32 %v250_v34, 0.0 }
 0x30a   :  { %631 = vmatmul.mubr.f32.vlgmr.msra.gmra.mrb[2].mxu0 %v251_v35 }
 0x3dd   :  { %v341_v44 = vpop.f32.mrb[2].mxu0 }
 0x3de   :  { %v963_v45 = vadd.f32 %v341_v44, %v274_v43  ;;  %v632_v46 = vpop.f32.mrb[3].mxu0 }
 0x3e0   :  { %345 = vadd.xlane.f32.xlu0 %v963_v45  ;;  %v348_v47 = vmul.f32 %v963_v45, %v963_v45 }
 0x3e2   :  { %349 = vadd.xlane.f32.xlu1 %v348_v47 }
 0x46d   :  { %v346_v3 = vpop.xlane.xlu0 %345 }
 0x46e   :  { %v347_v31 = vmul.f32 0.0078125, %v346_v3 }
 0x46f   :  { %v350_v32 = vpop.xlane.xlu1 %349 }
 0x470   :  { %v352_v33 = vmul.f32 %v347_v31, %v347_v31  ;;  %v351_v34 = vmul.f32 0.0078125, %v350_v32  ;;  %v355_v39 = vsub.f32 %v963_v45, %v347_v31 }
 0x472   :  { %v353_v35 = vsub.f32 %v351_v34, %v352_v33 }
 0x474   :  { %v354_v36 = vmax.f32 %v353_v35, 0.0 }
 0x476   :  { %v356_v37 = vadd.f32 1e-05, %v354_v36 }
 0x478   :  { %721 = vrsqrt.f32 %v356_v37 }
 0x482   :  { %v722_v40 = vpop.eup %721 }
 0x483   :  { %v358_v43 = vmul.f32 %v722_v40, %v355_v39 }
 0x485   :  { %v363_v44 = vmul.f32 %v362_v38, %v358_v43 }
 0x487   :  { %v368_v46 = vadd.f32 %v367_v41, %v363_v44 }
 0x489   :  { %v369_v47 = vmax.f32 %v368_v46, 0.0 }
 0x48b   :  { %479 = vmatmul.mubr.f32.vlgmr.msra.gmra.mrb[2].mxu1 %v369_v47 }
 0x55e   :  { %v480_v45 = vpop.f32.mrb[2].mxu1 }
 0x55f   :  { %v481_v53 = vadd.f32 %v480_v45, %v407_v49  ;;  %v482_v50 = vpop.f32.mrb[3].mxu1 }
 0x560   :  { %v483_v54 = vadd.f32 %v482_v50, %v411_v52 }
 0x561   :  { %485 = vst [vmem:[#allocation2] sm:$0xff] %v481_v53 }
 0x562   :  { %486 = vst [vmem:[#allocation2 + $0x8] sm:$0xff] %v483_v54 }
 0x563   :  { %734 = shalt.err (!%p731_p4)
}
 0x564   :  { %s735_s11 = scalar_lea.hbm %s1082_s7, 256 }
 0x565   :  { %p736_p5 = scmp.ne.s32.totalorder %s1082_s7, %s735_s11  ;;  %p739_p6 = scmp.lt.u32.totalorder %s735_s11, %s1082_s7 }
 0x567   :  { %p741_p7 = pnand %p739_p6, %p736_p5 }
 0x569   :  { %744 = shalt.err (!%p741_p7)
}
 0x56a   :  { %496 = dma.vmem_to_hbm [thread:$0]  %s494_s9, 256, %s1082_s7, [#allocation3]  }
 0x56b   :  { %745 = dma.done.wait [#allocation3], 256  }
 0x56c   :  { %746 = vsyncadd [#allocation3], 4294967040 }
 0x56d   :  { %500 = vsyncpa [#allocation3], 1 }

</bundles_post_ra>
